<compile_context>
chip_gen: v7x
topology: tpu7x:2x2x1
jax: 0.10.0
libtpu: 0.0.40
codegen_flags: <defaults>
</compile_context>

<pallas_src>
import jax
import jax.numpy as jnp
from jax.experimental import pallas as pl
from jax.experimental.pallas import tpu as pltpu


def _residual_add_kernel(fn_out_ref, res_ref, o_ref):
    # o = fn(x) + x   (elementwise, VPU; HBM/DMA bound)
    o_ref[...] = fn_out_ref[...] + res_ref[...]


# Below this size the pallas_call dispatch + pipeline overhead dwarfs the add.
_SMALL_BYTES = 128 * 1024


@jax.jit
def residual_add_pallas(fn_out: jax.Array, res: jax.Array) -> jax.Array:
    """Elementwise residual add: fn_out + res, lane-dense flattened tiling."""
    assert fn_out.shape == res.shape and fn_out.dtype == res.dtype
    orig_shape = fn_out.shape
    dtype = fn_out.dtype
    itemsize = jnp.dtype(dtype).itemsize
    n = fn_out.size

    # ---- fallbacks: tiny tensors, or ragged sizes (no pad-copy path) -------
    # ViT activations (B*S*768) are always a multiple of 128; for anything
    # else a plain fused XLA add beats padding both inputs + slicing output.
    if (n * itemsize < _SMALL_BYTES) or (n % 128 != 0):
        return fn_out + res

    # ---- pick a wide, lane-dense last dim (large multiple of 128) ----------
    lane = 128
    for cand in (4096, 2048, 1024, 512, 256, 128):
        if n % cand == 0:
            lane = cand
            break
    rows = n // lane

    # ---- dtype-aware sublane multiple (f32:8, bf16:16, int8/fp8:32) --------
    mult = max(8, 32 // itemsize)

    # ---- tile rows: ~4 MiB per block (HBM roofline plateau) ----------------
    target_bytes = 4 * 1024 * 1024
    tile_rows = max(mult, (target_bytes // (lane * itemsize)) // mult * mult)
    if tile_rows >= rows:
        # Whole array fits in one block: still split into >= 2 grid steps
        # when the sublane constraint allows, so v7x's 2 TensorCores both
        # get work (harmless on single-TC v5e/v6e).
        half = -(-rows // 2)                 # cdiv(rows, 2)
        half = -(-half // mult) * mult       # round up to sublane multiple
        tile_rows = half if half < rows else rows   # full-extent block is legal

    grid = (pl.cdiv(rows, tile_rows),)
    spec = pl.BlockSpec((tile_rows, lane), lambda i: (i, 0))

    # Contiguous reshape -> metadata only (no copy), keeps the alias real.
    a = fn_out.reshape(rows, lane)
    b = res.reshape(rows, lane)

    out2d = pl.pallas_call(
        _residual_add_kernel,
        out_shape=jax.ShapeDtypeStruct((rows, lane), dtype),
        grid_spec=pltpu.PrefetchScalarGridSpec(
            num_scalar_prefetch=0,
            grid=grid,
            in_specs=[spec, spec],
            out_specs=spec,
        ),
        # write the sum in place over fn_out's buffer (no 3rd HBM activation)
        input_output_aliases={0: 0},
        compiler_params=pltpu.CompilerParams(
            dimension_semantics=("parallel",),
            # 3 arrays x 2 pipeline buffers x 4 MiB = 24 MiB; explicit limit
            # covers v5e's 16 MiB scoped default and stays well inside v7x's
            # 64 MiB physical VMEM.
            vmem_limit_bytes=32 * 1024 * 1024,
        ),
        cost_estimate=pl.CostEstimate(
            flops=n,
            transcendentals=0,
            bytes_accessed=3 * n * itemsize,
        ),
    )(a, b)

    return out2d.reshape(orig_shape)


class ResidualAdd:
    """JAX/Pallas port of the PyTorch ResidualAdd wrapper."""

    # TODO(synk): when `fn`'s final op is itself a Pallas matmul kernel, fuse
    # this add into that kernel's accumulator-finalize epilogue instead of
    # running a standalone pass (≈3x less HBM traffic for this op).

    def __init__(self, fn):
        self.fn = fn

    def __call__(self, x, **kwargs):
        res = x
        x = self.fn(x, **kwargs)            # wrapped sub-module (plain JAX glue)
        return residual_add_pallas(x, res)  # the module's own `x += res`


if __name__ == "__main__":
    # Deterministic example: wrap a linear layer as `fn` (stand-in for the
    # ViT sub-block ResidualAdd normally wraps).  Shape is big enough
    # (2*256*128 f32 = 256 KiB) to take the Pallas path with a 2-step grid.
    B, S, H = 2, 256, 128
    key = jax.random.PRNGKey(0)
    kx, kw, kb = jax.random.split(key, 3)

    x = jax.random.normal(kx, (B, S, H), dtype=jnp.float32)
    W = jax.random.normal(kw, (H, H), dtype=jnp.float32) * 0.02
    b = jax.random.normal(kb, (H,), dtype=jnp.float32) * 0.02

    def fn(x):
        # deterministic stand-in sub-module: Linear(H, H)
        return jnp.einsum("bsh,hk->bsk", x, W) + b

    block = ResidualAdd(fn)
    out = jax.block_until_ready(block(x))

    # correctness check vs. pure-JAX reference
    ref = fn(x) + x
    assert out.shape == (B, S, H)
    assert jnp.allclose(out, ref, atol=1e-5, rtol=1e-5)

    # also exercise the tiny-tensor fallback path
    x_small = jax.random.normal(kx, (2, 8, 32), dtype=jnp.float32)
    out_small = jax.block_until_ready(residual_add_pallas(x_small * 2.0, x_small))
    assert jnp.allclose(out_small, x_small * 3.0, atol=1e-6, rtol=1e-6)

    print("KERNEL_OK")
</pallas_src>

<mosaic_0001>
module attributes {stable_mosaic.version = 11 : i64} {
  func.func @_residual_add_kernel(%arg0: i32, %arg1: memref<8x4096xf32, #tpu.memory_space<vmem>>, %arg2: memref<8x4096xf32, #tpu.memory_space<vmem>>, %arg3: memref<8x4096xf32, #tpu.memory_space<vmem>>) attributes {dimension_semantics = [#tpu.dimension_semantics<parallel>], iteration_bounds = array<i64: 2>, scalar_prefetch = 0 : i64, scratch_operands = 0 : i64, tpu.core_type = #tpu.core_type<tc>, window_params = [{transform_indices = @transform_0, window_bounds = array<i64: 8, 4096>}, {transform_indices = @transform_1, window_bounds = array<i64: 8, 4096>}, {transform_indices = @transform_2, window_bounds = array<i64: 8, 4096>}]} {
    %c0 = arith.constant 0 : index
    %c0_0 = arith.constant 0 : index
    %0 = vector.load %arg1[%c0, %c0_0] : memref<8x4096xf32, #tpu.memory_space<vmem>>, vector<8x4096xf32>
    %c0_1 = arith.constant 0 : index
    %c0_2 = arith.constant 0 : index
    %1 = vector.load %arg2[%c0_1, %c0_2] : memref<8x4096xf32, #tpu.memory_space<vmem>>, vector<8x4096xf32>
    %2 = arith.addf %0, %1 : vector<8x4096xf32>
    %c0_3 = arith.constant 0 : index
    %c0_4 = arith.constant 0 : index
    %3 = vector.load %arg3[%c0_3, %c0_4] : memref<8x4096xf32, #tpu.memory_space<vmem>>, vector<8x4096xf32>
    tpu.vector_store %arg3[%c0_3, %c0_4], %2 {strides = array<i32>} : memref<8x4096xf32, #tpu.memory_space<vmem>>, vector<8x4096xf32>,
    return
  }
  func.func @transform_0(%arg0: i32) -> (i32, i32) {
    %c0_i32 = arith.constant 0 : i32
    %c0_i32_0 = arith.constant 0 : i32
    return %arg0, %c0_i32 : i32, i32
  }
  func.func @transform_1(%arg0: i32) -> (i32, i32) {
    %c0_i32 = arith.constant 0 : i32
    %c0_i32_0 = arith.constant 0 : i32
    return %arg0, %c0_i32 : i32, i32
  }
  func.func @transform_2(%arg0: i32) -> (i32, i32) {
    %c0_i32 = arith.constant 0 : i32
    %c0_i32_0 = arith.constant 0 : i32
    return %arg0, %c0_i32 : i32, i32
  }
}

</mosaic_0001>

<bundles_post_ra>
// kernel: residual_add_pallas.1
= control target key start
LH: loop header
LB: loop body
LE: loop exit
PB: predicated region body
PF: predicated region fallthrough
CT: control target
= control target key end

     0   :  { %s406_s9 = smov 0   ;;  %s576_s0 = inlined_call_operand.vmem [shape: f32[16,4096], index: 0, kind: input, shape index: {}, may-alias: {0,2}]   ;;  %s577_s1 = inlined_call_operand.vmem [shape: f32[16,4096], index: 1, kind: input, shape index: {}]   ;;  %s578_s2 = inlined_call_operand.vmem [shape: f32[16,4096], index: 2, kind: output, shape index: {}, may-alias: {0,2}]  }
   0x1 LB: > { %s359_s10 = sadd.s32 4294967295, %s389_s9   ;;  %p363_p0 = scmp.ge.s32.totalorder %s389_s9, 1  ;;  %s389_s9 = sphi %s406_s9, %s12_s9  }
   0x2   : > { %p122_p1 = scmp.lt.s32.totalorder %s389_s9, 3 }
   0x4   : > { %p123_p2 = pnand %p363_p0, %p122_p1 }
   0x5   : > { %p149_p3 = scmp.lt.s32.totalorder (!%p123_p2), %s359_s10, 1 }
   0x6   : > { %126 = sbr.rel (%p123_p2) target bundleno = 46 (0x2e), region = 28 }
   0xd   : > { %s580_s10 = smov (!%p149_p3, %s359_s10), 1 }
   0xe   : > { %s372_s11 = sshll.u32 %s580_s10, 8 }
   0xf   : > { %s417_s14 = scalar_lea.vmem %s576_s0, %s372_s11  ;;  %s423_s17 = scalar_lea.vmem %s577_s1, %s372_s11 }
  0x10   : > { %v164_v0 = vld [vmem:[%s417_s14] sm:$0xff]  ;;  %v165_v1 = vld [vmem:[%s417_s14 + $0x8] sm:$0xff]  ;;  %v166_v2 = vld [vmem:[%s417_s14 + $0x10] sm:$0xff]  ;;  %s437_s20 = scalar_lea.vmem %s578_s2, %s372_s11 }
  0x11   : > { %v167_v3 = vld [vmem:[%s417_s14 + $0x18] sm:$0xff]  ;;  %v168_v4 = vld [vmem:[%s417_s14 + $0x20] sm:$0xff]  ;;  %v169_v5 = vld [vmem:[%s417_s14 + $0x28] sm:$0xff] }
  0x12   : > { %v170_v6 = vld [vmem:[%s417_s14 + $0x30] sm:$0xff]  ;;  %v171_v7 = vld [vmem:[%s417_s14 + $0x38] sm:$0xff]  ;;  %v172_v8 = vld [vmem:[%s417_s14 + $0x40] sm:$0xff] }
  0x13   : > { %v173_v9 = vld [vmem:[%s417_s14 + $0x48] sm:$0xff]  ;;  %v174_v10 = vld [vmem:[%s417_s14 + $0x50] sm:$0xff]  ;;  %v175_v11 = vld [vmem:[%s417_s14 + $0x58] sm:$0xff] }
  0x14   : > { %v176_v12 = vld [vmem:[%s417_s14 + $0x60] sm:$0xff]  ;;  %v177_v13 = vld [vmem:[%s417_s14 + $0x68] sm:$0xff]  ;;  %v178_v14 = vld [vmem:[%s417_s14 + $0x70] sm:$0xff] }
  0x15   : > { %v179_v15 = vld [vmem:[%s417_s14 + $0x78] sm:$0xff]  ;;  %v446_v16 = vld [vmem:[%s417_s14 + $0x80] sm:$0xff]  ;;  %v449_v17 = vld [vmem:[%s417_s14 + $0x88] sm:$0xff] }
  0x16   : > { %v452_v18 = vld [vmem:[%s417_s14 + $0x90] sm:$0xff]  ;;  %v455_v19 = vld [vmem:[%s417_s14 + $0x98] sm:$0xff]  ;;  %v458_v20 = vld [vmem:[%s417_s14 + $0xa0] sm:$0xff] }
  0x17   : > { %v461_v21 = vld [vmem:[%s417_s14 + $0xa8] sm:$0xff]  ;;  %v464_v22 = vld [vmem:[%s417_s14 + $0xb0] sm:$0xff]  ;;  %v467_v23 = vld [vmem:[%s417_s14 + $0xb8] sm:$0xff] }
  0x18   : > { %v470_v24 = vld [vmem:[%s417_s14 + $0xc0] sm:$0xff]  ;;  %v473_v25 = vld [vmem:[%s417_s14 + $0xc8] sm:$0xff]  ;;  %v476_v26 = vld [vmem:[%s417_s14 + $0xd0] sm:$0xff] }
  0x19   : > { %v479_v27 = vld [vmem:[%s417_s14 + $0xd8] sm:$0xff]  ;;  %v482_v28 = vld [vmem:[%s417_s14 + $0xe0] sm:$0xff]  ;;  %v485_v29 = vld [vmem:[%s417_s14 + $0xe8] sm:$0xff] }
  0x1a   : > { %v488_v30 = vld [vmem:[%s417_s14 + $0xf0] sm:$0xff]  ;;  %v491_v31 = vld [vmem:[%s417_s14 + $0xf8] sm:$0xff]  ;;  %v196_v32 = vld [vmem:[%s423_s17] sm:$0xff] }
  0x1b   : > { %v228_v33 = vadd.f32 %v196_v32, %v164_v0  ;;  %v197_v34 = vld [vmem:[%s423_s17 + $0x8] sm:$0xff]  ;;  %v198_v35 = vld [vmem:[%s423_s17 + $0x10] sm:$0xff]  ;;  %v199_v36 = vld [vmem:[%s423_s17 + $0x18] sm:$0xff] }
  0x1c   : > { %v229_v37 = vadd.f32 %v197_v34, %v165_v1  ;;  %v230_v38 = vadd.f32 %v198_v35, %v166_v2  ;;  %v231_v39 = vadd.f32 %v199_v36, %v167_v3  ;;  %v200_v40 = vld [vmem:[%s423_s17 + $0x20] sm:$0xff]  ;;  %v201_v41 = vld [vmem:[%s423_s17 + $0x28] sm:$0xff]  ;;  %v202_v42 = vld [vmem:[%s423_s17 + $0x30] sm:$0xff] }
  0x1d   : > { %260 = vst [vmem:[%s437_s20] sm:$0xff] %v228_v33  ;;  %v232_v43 = vadd.f32 %v200_v40, %v168_v4  ;;  %v233_v44 = vadd.f32 %v201_v41, %v169_v5  ;;  %v234_v45 = vadd.f32 %v202_v42, %v170_v6  ;;  %v203_v46 = vld [vmem:[%s423_s17 + $0x38] sm:$0xff]  ;;  %v204_v47 = vld [vmem:[%s423_s17 + $0x40] sm:$0xff]  ;;  %v205_v48 = vld [vmem:[%s423_s17 + $0x48] sm:$0xff] }
  0x1e   : > { %261 = vst [vmem:[%s437_s20 + $0x8] sm:$0xff] %v229_v37  ;;  %262 = vst [vmem:[%s437_s20 + $0x10] sm:$0xff] %v230_v38  ;;  %v235_v49 = vadd.f32 %v203_v46, %v171_v7  ;;  %v236_v50 = vadd.f32 %v204_v47, %v172_v8  ;;  %v237_v51 = vadd.f32 %v205_v48, %v173_v9  ;;  %v206_v52 = vld [vmem:[%s423_s17 + $0x50] sm:$0xff]  ;;  %v207_v53 = vld [vmem:[%s423_s17 + $0x58] sm:$0xff] }
  0x1f   : > { %263 = vst [vmem:[%s437_s20 + $0x18] sm:$0xff] %v231_v39  ;;  %v208_v54 = vld [vmem:[%s423_s17 + $0x60] sm:$0xff]  ;;  %264 = vst [vmem:[%s437_s20 + $0x20] sm:$0xff] %v232_v43  ;;  %v238_v55 = vadd.f32 %v206_v52, %v174_v10  ;;  %v239_v56 = vadd.f32 %v207_v53, %v175_v11  ;;  %v209_v58 = vld [vmem:[%s423_s17 + $0x68] sm:$0xff] }
  0x20   : > { %265 = vst [vmem:[%s437_s20 + $0x28] sm:$0xff] %v233_v44  ;;  %266 = vst [vmem:[%s437_s20 + $0x30] sm:$0xff] %v234_v45  ;;  %v240_v57 = vadd.f32 %v208_v54, %v176_v12  ;;  %v210_v59 = vld [vmem:[%s423_s17 + $0x70] sm:$0xff]  ;;  %v211_v60 = vld [vmem:[%s423_s17 + $0x78] sm:$0xff]  ;;  %v241_v61 = vadd.f32 %v209_v58, %v177_v13 }
  0x21   : > { %267 = vst [vmem:[%s437_s20 + $0x38] sm:$0xff] %v235_v49  ;;  %268 = vst [vmem:[%s437_s20 + $0x40] sm:$0xff] %v236_v50  ;;  %v242_v62 = vadd.f32 %v210_v59, %v178_v14  ;;  %v243_v63 = vadd.f32 %v211_v60, %v179_v15  ;;  %v212_v0 = vld [vmem:[%s423_s17 + $0x80] sm:$0xff]  ;;  %v213_v1 = vld [vmem:[%s423_s17 + $0x88] sm:$0xff] }
  0x22   : > { %269 = vst [vmem:[%s437_s20 + $0x48] sm:$0xff] %v237_v51  ;;  %v214_v2 = vld [vmem:[%s423_s17 + $0x90] sm:$0xff]  ;;  %270 = vst [vmem:[%s437_s20 + $0x50] sm:$0xff] %v238_v55  ;;  %v244_v3 = vadd.f32 %v212_v0, %v446_v16  ;;  %v245_v4 = vadd.f32 %v213_v1, %v449_v17  ;;  %v215_v6 = vld [vmem:[%s423_s17 + $0x98] sm:$0xff] }
  0x23   : > { %271 = vst [vmem:[%s437_s20 + $0x58] sm:$0xff] %v239_v56  ;;  %272 = vst [vmem:[%s437_s20 + $0x60] sm:$0xff] %v240_v57  ;;  %v246_v5 = vadd.f32 %v214_v2, %v452_v18  ;;  %v216_v7 = vld [vmem:[%s423_s17 + $0xa0] sm:$0xff]  ;;  %v217_v8 = vld [vmem:[%s423_s17 + $0xa8] sm:$0xff]  ;;  %v247_v9 = vadd.f32 %v215_v6, %v455_v19 }
  0x24   : > { %273 = vst [vmem:[%s437_s20 + $0x68] sm:$0xff] %v241_v61  ;;  %274 = vst [vmem:[%s437_s20 + $0x70] sm:$0xff] %v242_v62  ;;  %v248_v10 = vadd.f32 %v216_v7, %v458_v20  ;;  %v249_v11 = vadd.f32 %v217_v8, %v461_v21  ;;  %v218_v12 = vld [vmem:[%s423_s17 + $0xb0] sm:$0xff]  ;;  %v219_v13 = vld [vmem:[%s423_s17 + $0xb8] sm:$0xff] }
  0x25   : > { %275 = vst [vmem:[%s437_s20 + $0x78] sm:$0xff] %v243_v63  ;;  %v220_v14 = vld [vmem:[%s423_s17 + $0xc0] sm:$0xff]  ;;  %276 = vst [vmem:[%s437_s20 + $0x80] sm:$0xff] %v244_v3  ;;  %v250_v15 = vadd.f32 %v218_v12, %v464_v22  ;;  %v251_v16 = vadd.f32 %v219_v13, %v467_v23  ;;  %v221_v18 = vld [vmem:[%s423_s17 + $0xc8] sm:$0xff] }
  0x26   : > { %277 = vst [vmem:[%s437_s20 + $0x88] sm:$0xff] %v245_v4  ;;  %278 = vst [vmem:[%s437_s20 + $0x90] sm:$0xff] %v246_v5  ;;  %v252_v17 = vadd.f32 %v220_v14, %v470_v24  ;;  %v222_v19 = vld [vmem:[%s423_s17 + $0xd0] sm:$0xff]  ;;  %v223_v20 = vld [vmem:[%s423_s17 + $0xd8] sm:$0xff]  ;;  %v253_v21 = vadd.f32 %v221_v18, %v473_v25 }
  0x27   : > { %279 = vst [vmem:[%s437_s20 + $0x98] sm:$0xff] %v247_v9  ;;  %280 = vst [vmem:[%s437_s20 + $0xa0] sm:$0xff] %v248_v10  ;;  %v254_v22 = vadd.f32 %v222_v19, %v476_v26  ;;  %v255_v23 = vadd.f32 %v223_v20, %v479_v27  ;;  %v224_v32 = vld [vmem:[%s423_s17 + $0xe0] sm:$0xff]  ;;  %v225_v24 = vld [vmem:[%s423_s17 + $0xe8] sm:$0xff] }
  0x28   : > { %281 = vst [vmem:[%s437_s20 + $0xa8] sm:$0xff] %v249_v11  ;;  %v226_v33 = vld [vmem:[%s423_s17 + $0xf0] sm:$0xff]  ;;  %282 = vst [vmem:[%s437_s20 + $0xb0] sm:$0xff] %v250_v15  ;;  %v256_v34 = vadd.f32 %v224_v32, %v482_v28  ;;  %v257_v35 = vadd.f32 %v225_v24, %v485_v29  ;;  %v227_v36 = vld [vmem:[%s423_s17 + $0xf8] sm:$0xff] }
  0x29   : > { %283 = vst [vmem:[%s437_s20 + $0xb8] sm:$0xff] %v251_v16  ;;  %284 = vst [vmem:[%s437_s20 + $0xc0] sm:$0xff] %v252_v17  ;;  %v258_v25 = vadd.f32 %v226_v33, %v488_v30  ;;  %v259_v26 = vadd.f32 %v227_v36, %v491_v31 }
  0x2a   : > { %285 = vst [vmem:[%s437_s20 + $0xc8] sm:$0xff] %v253_v21  ;;  %286 = vst [vmem:[%s437_s20 + $0xd0] sm:$0xff] %v254_v22 }
  0x2b   : > { %287 = vst [vmem:[%s437_s20 + $0xd8] sm:$0xff] %v255_v23  ;;  %288 = vst [vmem:[%s437_s20 + $0xe0] sm:$0xff] %v256_v34 }
  0x2c   : > { %289 = vst [vmem:[%s437_s20 + $0xe8] sm:$0xff] %v257_v35  ;;  %290 = vst [vmem:[%s437_s20 + $0xf0] sm:$0xff] %v258_v25 }
  0x2d   : > { %291 = vst [vmem:[%s437_s20 + $0xf8] sm:$0xff] %v259_v26 }
  0x2e PF: > { %s12_s9 = sadd.s32 1, %s389_s9  }
  0x2f   : > { %p9_p4 = scmp.ge.s32.totalorder %s12_s9, 4  }
  0x31   :  { %11 = sbr.rel (!%p9_p4) target bundleno = 1 (0x1), region = 61 }

</bundles_post_ra>
